<compile_context>
chip_gen: v7x
topology: tpu7x:2x2x1
jax: 0.10.0
libtpu: 0.0.40
codegen_flags: <defaults>
</compile_context>

<pallas_src>
import jax
import jax.numpy as jnp
import numpy as np
from jax.experimental import pallas as pl
from jax.experimental.pallas import tpu as pltpu


# ---------------------------------------------------------------------------
# Fused kernel: calculate_input + both 1x1-conv layers (pair of images per
# step, cond & uncond fused along lanes) + calculate_denoised + CFG combine.
# ---------------------------------------------------------------------------
def _cfg_pair_kernel(scale_ref, x_ref, sig_ref, bias_ref,
                     w1_ref, w2_ref, b2_ref, o_ref):
    thw = x_ref.shape[-1]
    scale = scale_ref[0]                              # cond_scale (SMEM)

    x = x_ref[...]                                    # (2C, THW)  f32
    sig = sig_ref[...]                                # (2C, 1)    f32, per image

    # model_sampling.calculate_input: x / sqrt(sigma^2 + 1)
    xc = x * jax.lax.rsqrt(sig * sig + 1.0)

    # Layer 1 (1x1 conv) for BOTH images of the pair in a single MXU dot
    # (block-diagonal weights); bf16 operands, f32 accumulation.
    pre = jnp.dot(w1_ref[...], xc.astype(jnp.bfloat16),
                  preferred_element_type=jnp.float32)            # (2Hh, THW)

    # cond & uncond branches fused along lanes: one tanh stream, one 2nd dot.
    # bias_ref[0] = uncond bias column, bias_ref[1] = cond bias column.
    h = jnp.tanh(jnp.concatenate([pre + bias_ref[0],
                                  pre + bias_ref[1]], axis=-1))  # (2Hh, 2*THW)
    eps2 = jnp.dot(w2_ref[...], h.astype(jnp.bfloat16),
                   preferred_element_type=jnp.float32) + b2_ref[...]  # (2C, 2*THW)

    eps_u = eps2[:, :thw]
    eps_c = eps2[:, thw:]

    # CFG combine at the eps level (count division == exactly 1.0, omitted),
    # then calculate_denoised: x - eps * sigma.
    eps = eps_u + (eps_c - eps_u) * scale
    o_ref[...] = (x - eps * sig).astype(o_ref.dtype)


# ---------------------------------------------------------------------------
# Shared helper: x-independent per-image bias for the hidden layer
#   b1 + timestep_embedding(0.25*log(sigma)) + W_ctx @ mean(context)
# Used by both the Pallas wrapper and the pure-JAX reference.
# ---------------------------------------------------------------------------
def _bias_slabs(sigma, cond_ctx, uncond_ctx, params):
    f32 = jnp.float32
    sigma = sigma.astype(f32)
    tval = 0.25 * jnp.log(sigma)                                  # timestep(sigma)
    temb = tval[:, None] * params["wt"][0] + params["bt"][0]      # (N, Hh)
    cvec_u = jnp.mean(uncond_ctx.astype(f32), axis=1) @ params["wctx"]
    cvec_c = jnp.mean(cond_ctx.astype(f32), axis=1) @ params["wctx"]
    bias_u = params["b1"][0] + temb + cvec_u                      # (N, Hh)
    bias_c = params["b1"][0] + temb + cvec_c
    return bias_u, bias_c


def _pick_hw_tile(hw):
    # Lane-tile the spatial axis for large latents (bounds VMEM on v7x and
    # gives the software pipeline >1 step); tiles are multiples of 128.
    if hw % 128 != 0:
        return hw
    for t in (2048, 1024, 512, 256, 128):
        if t <= hw and hw % t == 0:
            return t
    return hw


# ---------------------------------------------------------------------------
# Wrapper: layout plumbing (pair packing, block-diag weights, bias merge).
# ---------------------------------------------------------------------------
def cfg_noise_predictor(x, sigma, cond_ctx, uncond_ctx, cond_scale, params):
    N, C, H, W = x.shape
    HW = H * W
    Hh = params["w1"].shape[1]

    x = x.astype(jnp.float32)
    sigma = sigma.astype(jnp.float32)

    # x-independent per-image bias (hoisted out of the kernel).
    bias_u, bias_c = _bias_slabs(sigma, cond_ctx, uncond_ctx, params)

    # Pad batch to an even number of images (two images share one grid step).
    n_pad = N + (N % 2)
    if n_pad != N:
        x = jnp.concatenate([x, x[-1:]], axis=0)
        sigma = jnp.concatenate([sigma, sigma[-1:]])
        bias_u = jnp.concatenate([bias_u, bias_u[-1:]], axis=0)
        bias_c = jnp.concatenate([bias_c, bias_c[-1:]], axis=0)
    P = n_pad // 2

    # Lane/sublane friendly layouts (free reshapes / tiny arrays).
    x_pairs = x.reshape(P, 2 * C, HW)                              # 8 sublanes full
    sig_col = jnp.broadcast_to(sigma.reshape(P, 2, 1),
                               (P, 2, C)).reshape(P, 2 * C, 1)
    bias = jnp.stack([bias_u, bias_c], axis=1)                     # (n_pad, 2, Hh)
    bias = (bias.reshape(P, 2, 2, Hh)                              # (pair, img, branch, Hh)
                .transpose(0, 2, 1, 3)                             # (pair, branch, img, Hh)
                .reshape(P, 2, 2 * Hh, 1))

    # Block-diagonal (per-pair) weights: one MXU dot covers both images.
    eye2 = jnp.eye(2, dtype=jnp.float32)
    w1blk = jnp.kron(eye2, params["w1"].T).astype(jnp.bfloat16)    # (2Hh, 2C)
    w2blk = jnp.kron(eye2, params["w2"].T).astype(jnp.bfloat16)    # (2C, 2Hh)
    b2col = jnp.tile(params["b2"].reshape(C, 1), (2, 1)).astype(jnp.float32)

    scale_arr = jnp.asarray(cond_scale, jnp.float32).reshape(1)

    THW = _pick_hw_tile(HW)
    grid = (P, HW // THW)

    # Explicit VMEM budget (blocks + intermediates, with headroom), clamped to
    # stay inside v7x's 64 MiB physical VMEM.
    est = 4 * (2 * C * THW) * 4 * 4          # x & out blocks, double-buffered, f32
    est += 4 * (2 * Hh * 2 * THW) * 4        # pre / tanh-slab / eps sized f32 temps
    est += (2 * Hh * 2 * C) * 2 * 2          # bf16 weight blocks
    vmem_limit = int(min(64 * 2 ** 20, max(16 * 2 ** 20, 4 * est)))

    smem = pl.BlockSpec(memory_space=pltpu.MemorySpace.SMEM)

    out = pl.pallas_call(
        _cfg_pair_kernel,
        grid=grid,
        in_specs=[
            smem,                                                       # cond_scale (1,)
            pl.BlockSpec((pl.Squeezed(), 2 * C, THW),
                         lambda p, t: (p, 0, t)),                       # x pairs
            pl.BlockSpec((pl.Squeezed(), 2 * C, 1),
                         lambda p, t: (p, 0, 0)),                       # sigma column
            pl.BlockSpec((pl.Squeezed(), 2, 2 * Hh, 1),
                         lambda p, t: (p, 0, 0, 0)),                    # [uncond, cond] bias
            pl.BlockSpec((2 * Hh, 2 * C), lambda p, t: (0, 0)),         # W1 block-diag (bf16)
            pl.BlockSpec((2 * C, 2 * Hh), lambda p, t: (0, 0)),         # W2 block-diag (bf16)
            pl.BlockSpec((2 * C, 1), lambda p, t: (0, 0)),              # b2 column
        ],
        out_specs=pl.BlockSpec((pl.Squeezed(), 2 * C, THW),
                               lambda p, t: (p, 0, t)),
        out_shape=jax.ShapeDtypeStruct((P, 2 * C, HW), jnp.float32),
        compiler_params=pltpu.CompilerParams(
            dimension_semantics=("parallel", "parallel"),
            vmem_limit_bytes=vmem_limit),
    )(scale_arr, x_pairs, sig_col, bias, w1blk, w2blk, b2col)

    return out.reshape(n_pad, C, H, W)[:N]


# ---------------------------------------------------------------------------
# Pure-JAX reference (for verification).  Mirrors the module's math; matmul
# operands are cast to bf16 (f32 accumulation) to match the kernel's MXU
# precision, so kernel and reference agree far inside the test tolerance.
# ---------------------------------------------------------------------------
def ref_cfg_noise_predictor(x, sigma, cond_ctx, uncond_ctx, cond_scale, params):
    N, C, H, W = x.shape
    f32, bf16 = jnp.float32, jnp.bfloat16
    x = x.astype(f32)
    sb = sigma.astype(f32)[:, None, None, None]
    xc = x * jax.lax.rsqrt(sb * sb + 1.0)                 # calculate_input
    xf = jnp.transpose(xc, (0, 2, 3, 1)).reshape(N, H * W, C)

    bias_u, bias_c = _bias_slabs(sigma, cond_ctx, uncond_ctx, params)
    w1 = params["w1"].astype(bf16)
    w2 = params["w2"].astype(bf16)

    def eps_of(bias):
        h = jnp.tanh(jnp.matmul(xf.astype(bf16), w1,
                                preferred_element_type=f32) + bias[:, None, :])
        e = jnp.matmul(h.astype(bf16), w2,
                       preferred_element_type=f32) + params["b2"]
        return jnp.transpose(e.reshape(N, H, W, C), (0, 3, 1, 2))

    eps_c = eps_of(bias_c)
    eps_u = eps_of(bias_u)
    den_c = x - eps_c * sb                                # calculate_denoised
    den_u = x - eps_u * sb
    out_c = den_c / (1.0 + 1e-37)                         # calc_cond_uncond_batch
    out_u = den_u / (1.0 + 1e-37)
    return out_u + (out_c - out_u) * cond_scale           # CFG combine


# ---------------------------------------------------------------------------
if __name__ == "__main__":
    key = jax.random.PRNGKey(0)
    ks = jax.random.split(key, 10)

    N, C, H, W = 2, 4, 16, 16
    T, D, Hh = 8, 32, 32

    x = jax.random.normal(ks[0], (N, C, H, W), jnp.float32)
    sigma = jnp.array([0.7, 1.4], jnp.float32)
    cond_ctx = jax.random.normal(ks[1], (N, T, D), jnp.float32)
    uncond_ctx = jax.random.normal(ks[2], (N, T, D), jnp.float32)
    cond_scale = 7.5

    # deterministic synthetic diffusion-model parameters
    params = {
        "w1":   0.20 * jax.random.normal(ks[3], (C, Hh), jnp.float32),
        "b1":   0.05 * jax.random.normal(ks[4], (1, Hh), jnp.float32),
        "w2":   0.20 * jax.random.normal(ks[5], (Hh, C), jnp.float32),
        "b2":   0.05 * jax.random.normal(ks[6], (1, C), jnp.float32),
        "wctx": 0.10 * jax.random.normal(ks[7], (D, Hh), jnp.float32),
        "wt":   0.10 * jax.random.normal(ks[8], (1, Hh), jnp.float32),
        "bt":   0.05 * jax.random.normal(ks[9], (1, Hh), jnp.float32),
    }

    out = cfg_noise_predictor(x, sigma, cond_ctx, uncond_ctx, cond_scale, params)
    out = jax.block_until_ready(out)

    ref = ref_cfg_noise_predictor(x, sigma, cond_ctx, uncond_ctx, cond_scale,
                                  params)
    assert out.shape == (N, C, H, W), out.shape
    # Tolerance budget: typical agreement is ~1e-6; the bound covers a rare
    # one-bf16-ulp difference in an MXU operand amplified by cond_scale*sigma.
    np.testing.assert_allclose(np.asarray(out), np.asarray(ref),
                               rtol=2e-2, atol=2e-2)
    print("KERNEL_OK")
</pallas_src>

<mosaic_0001>
module attributes {stable_mosaic.version = 11 : i64} {
  func.func @_cfg_pair_kernel(%arg0: i32, %arg1: i32, %arg2: memref<1xf32, #tpu.memory_space<smem>>, %arg3: memref<1x8x256xf32, #tpu.memory_space<vmem>>, %arg4: memref<1x8x1xf32, #tpu.memory_space<vmem>>, %arg5: memref<1x2x64x1xf32, #tpu.memory_space<vmem>>, %arg6: memref<64x8xbf16, #tpu.memory_space<vmem>>, %arg7: memref<8x64xbf16, #tpu.memory_space<vmem>>, %arg8: memref<8x1xf32, #tpu.memory_space<vmem>>, %arg9: memref<1x8x256xf32, #tpu.memory_space<vmem>>) attributes {dimension_semantics = [#tpu.dimension_semantics<parallel>, #tpu.dimension_semantics<parallel>], iteration_bounds = array<i64: 1, 1>, scalar_prefetch = 0 : i64, scratch_operands = 0 : i64, tpu.core_type = #tpu.core_type<tc>, window_params = [{transform_indices = @transform_0, window_bounds = array<i64: 1>}, {transform_indices = @transform_1, window_bounds = array<i64: 1, 8, 256>}, {transform_indices = @transform_2, window_bounds = array<i64: 1, 8, 1>}, {transform_indices = @transform_3, window_bounds = array<i64: 1, 2, 64, 1>}, {pipeline_mode = #tpu.pipeline_mode<synchronous>, transform_indices = @transform_4, window_bounds = array<i64: 64, 8>}, {pipeline_mode = #tpu.pipeline_mode<synchronous>, transform_indices = @transform_5, window_bounds = array<i64: 8, 64>}, {pipeline_mode = #tpu.pipeline_mode<synchronous>, transform_indices = @transform_6, window_bounds = array<i64: 8, 1>}, {transform_indices = @transform_7, window_bounds = array<i64: 1, 8, 256>}]} {
    %c0 = arith.constant 0 : index
    %0 = memref.load %arg2[%c0] : memref<1xf32, #tpu.memory_space<smem>>
    %c0_0 = arith.constant 0 : index
    %c0_1 = arith.constant 0 : index
    %c0_2 = arith.constant 0 : index
    %1 = vector.load %arg3[%c0_0, %c0_1, %c0_2] : memref<1x8x256xf32, #tpu.memory_space<vmem>>, vector<1x8x256xf32>
    %2 = vector.shape_cast %1 : vector<1x8x256xf32> to vector<8x256xf32>
    %c0_3 = arith.constant 0 : index
    %c0_4 = arith.constant 0 : index
    %c0_5 = arith.constant 0 : index
    %3 = vector.load %arg4[%c0_3, %c0_4, %c0_5] : memref<1x8x1xf32, #tpu.memory_space<vmem>>, vector<1x8x1xf32>
    %4 = vector.shape_cast %3 : vector<1x8x1xf32> to vector<8x1xf32>
    %5 = arith.mulf %4, %4 : vector<8x1xf32>
    %cst = arith.constant 1.000000e+00 : f32
    %6 = vector.broadcast %cst : f32 to vector<8x1xf32>
    %7 = arith.addf %5, %6 : vector<8x1xf32>
    %8 = math.rsqrt %7 : vector<8x1xf32>
    %9 = vector.broadcast %8 : vector<8x1xf32> to vector<8x256xf32>
    %10 = arith.mulf %2, %9 : vector<8x256xf32>
    %c0_6 = arith.constant 0 : index
    %c0_7 = arith.constant 0 : index
    %11 = vector.load %arg6[%c0_6, %c0_7] : memref<64x8xbf16, #tpu.memory_space<vmem>>, vector<64x8xbf16>
    %12 = arith.truncf %10 : vector<8x256xf32> to vector<8x256xbf16>
    %cst_8 = arith.constant dense<0.000000e+00> : vector<64x256xf32>
    %13 = tpu.matmul %11, %12, %cst_8 {dimension_numbers = #tpu.dot_dimension_numbers<[1], [0], [0], [1], [0, 0, 1, 1], [], []>} : vector<64x8xbf16>, vector<8x256xbf16>, vector<64x256xf32> -> vector<64x256xf32>
    %c0_9 = arith.constant 0 : index
    %c0_10 = arith.constant 0 : index
    %c0_11 = arith.constant 0 : index
    %c0_12 = arith.constant 0 : index
    %14 = vector.load %arg5[%c0_9, %c0_10, %c0_11, %c0_12] : memref<1x2x64x1xf32, #tpu.memory_space<vmem>>, vector<1x1x64x1xf32>
    %15 = vector.shape_cast %14 : vector<1x1x64x1xf32> to vector<64x1xf32>
    %16 = vector.broadcast %15 : vector<64x1xf32> to vector<64x256xf32>
    %17 = arith.addf %13, %16 : vector<64x256xf32>
    %c0_13 = arith.constant 0 : index
    %c1 = arith.constant 1 : index
    %c0_14 = arith.constant 0 : index
    %c0_15 = arith.constant 0 : index
    %18 = vector.load %arg5[%c0_13, %c1, %c0_14, %c0_15] : memref<1x2x64x1xf32, #tpu.memory_space<vmem>>, vector<1x1x64x1xf32>
    %19 = vector.shape_cast %18 : vector<1x1x64x1xf32> to vector<64x1xf32>
    %20 = vector.broadcast %19 : vector<64x1xf32> to vector<64x256xf32>
    %21 = arith.addf %13, %20 : vector<64x256xf32>
    %22 = tpu.concatenate %17, %21 in 1 : vector<64x256xf32>, vector<64x256xf32> -> vector<64x512xf32>
    %23 = math.tanh %22 : vector<64x512xf32>
    %c0_16 = arith.constant 0 : index
    %c0_17 = arith.constant 0 : index
    %24 = vector.load %arg7[%c0_16, %c0_17] : memref<8x64xbf16, #tpu.memory_space<vmem>>, vector<8x64xbf16>
    %25 = arith.truncf %23 : vector<64x512xf32> to vector<64x512xbf16>
    %cst_18 = arith.constant dense<0.000000e+00> : vector<8x512xf32>
    %26 = tpu.matmul %24, %25, %cst_18 {dimension_numbers = #tpu.dot_dimension_numbers<[1], [0], [0], [1], [0, 0, 1, 1], [], []>} : vector<8x64xbf16>, vector<64x512xbf16>, vector<8x512xf32> -> vector<8x512xf32>
    %c0_19 = arith.constant 0 : index
    %c0_20 = arith.constant 0 : index
    %27 = vector.load %arg8[%c0_19, %c0_20] : memref<8x1xf32, #tpu.memory_space<vmem>>, vector<8x1xf32>
    %28 = vector.broadcast %27 : vector<8x1xf32> to vector<8x512xf32>
    %29 = arith.addf %26, %28 : vector<8x512xf32>
    %30 = vector.extract_strided_slice %29 {offsets = [0, 0], sizes = [8, 256], strides = [1, 1]} : vector<8x512xf32> to vector<8x256xf32>
    %31 = vector.extract_strided_slice %29 {offsets = [0, 256], sizes = [8, 256], strides = [1, 1]} : vector<8x512xf32> to vector<8x256xf32>
    %32 = arith.subf %31, %30 : vector<8x256xf32>
    %33 = vector.broadcast %0 : f32 to vector<8x256xf32>
    %34 = arith.mulf %32, %33 : vector<8x256xf32>
    %35 = arith.addf %30, %34 : vector<8x256xf32>
    %36 = vector.broadcast %4 : vector<8x1xf32> to vector<8x256xf32>
    %37 = arith.mulf %35, %36 : vector<8x256xf32>
    %38 = arith.subf %2, %37 : vector<8x256xf32>
    %c0_21 = arith.constant 0 : index
    %c0_22 = arith.constant 0 : index
    %c0_23 = arith.constant 0 : index
    %39 = vector.load %arg9[%c0_21, %c0_22, %c0_23] : memref<1x8x256xf32, #tpu.memory_space<vmem>>, vector<1x8x256xf32>
    %40 = vector.shape_cast %39 : vector<1x8x256xf32> to vector<8x256xf32>
    %41 = vector.shape_cast %38 : vector<8x256xf32> to vector<1x8x256xf32>
    tpu.vector_store %arg9[%c0_21, %c0_22, %c0_23], %41 {strides = array<i32>} : memref<1x8x256xf32, #tpu.memory_space<vmem>>, vector<1x8x256xf32>,
    return
  }
  func.func @transform_0(%arg0: i32, %arg1: i32) -> i32 {
    %c0_i32 = arith.constant 0 : i32
    %c0_i32_0 = arith.constant 0 : i32
    return %c0_i32 : i32
  }
  func.func @transform_1(%arg0: i32, %arg1: i32) -> (i32, i32, i32) {
    %c0_i32 = arith.constant 0 : i32
    %c0_i32_0 = arith.constant 0 : i32
    return %arg0, %c0_i32, %arg1 : i32, i32, i32
  }
  func.func @transform_2(%arg0: i32, %arg1: i32) -> (i32, i32, i32) {
    %c0_i32 = arith.constant 0 : i32
    %c0_i32_0 = arith.constant 0 : i32
    %c0_i32_1 = arith.constant 0 : i32
    return %arg0, %c0_i32, %c0_i32_0 : i32, i32, i32
  }
  func.func @transform_3(%arg0: i32, %arg1: i32) -> (i32, i32, i32, i32) {
    %c0_i32 = arith.constant 0 : i32
    %c0_i32_0 = arith.constant 0 : i32
    %c0_i32_1 = arith.constant 0 : i32
    %c0_i32_2 = arith.constant 0 : i32
    return %arg0, %c0_i32, %c0_i32_0, %c0_i32_1 : i32, i32, i32, i32
  }
  func.func @transform_4(%arg0: i32, %arg1: i32) -> (i32, i32) {
    %c0_i32 = arith.constant 0 : i32
    %c0_i32_0 = arith.constant 0 : i32
    %c0_i32_1 = arith.constant 0 : i32
    return %c0_i32, %c0_i32_0 : i32, i32
  }
  func.func @transform_5(%arg0: i32, %arg1: i32) -> (i32, i32) {
    %c0_i32 = arith.constant 0 : i32
    %c0_i32_0 = arith.constant 0 : i32
    %c0_i32_1 = arith.constant 0 : i32
    return %c0_i32, %c0_i32_0 : i32, i32
  }
  func.func @transform_6(%arg0: i32, %arg1: i32) -> (i32, i32) {
    %c0_i32 = arith.constant 0 : i32
    %c0_i32_0 = arith.constant 0 : i32
    %c0_i32_1 = arith.constant 0 : i32
    return %c0_i32, %c0_i32_0 : i32, i32
  }
  func.func @transform_7(%arg0: i32, %arg1: i32) -> (i32, i32, i32) {
    %c0_i32 = arith.constant 0 : i32
    %c0_i32_0 = arith.constant 0 : i32
    return %arg0, %c0_i32, %arg1 : i32, i32, i32
  }
}

</mosaic_0001>

<bundles_post_ra>
// kernel: tpu_custom_call.1
= control target key start
LH: loop header
LB: loop body
LE: loop exit
PB: predicated region body
PF: predicated region fallthrough
CT: control target
= control target key end

     0   :  { %v585_v1 = vmov 0   ;;  %s769_s0 = inlined_call_operand.<no memory space> [shape: f32[1], index: 0, kind: input, shape index: {}]   ;;  %s770_s1 = inlined_call_operand.vmem [shape: f32[1,8,256], index: 1, kind: input, shape index: {}]   ;;  %s771_s2 = inlined_call_operand.vmem [shape: f32[1,8,1], index: 2, kind: input, shape index: {}]   ;;  %s772_s3 = inlined_call_operand.vmem [shape: f32[1,2,64,1], index: 3, kind: input, shape index: {}]   ;;  %s773_s4 = inlined_call_operand.vmem [shape: bf16[64,8], index: 4, kind: input, shape index: {}]   ;;  %s774_s5 = inlined_call_operand.vmem [shape: bf16[8,64], index: 5, kind: input, shape index: {}]   ;;  %s775_s6 = inlined_call_operand.vmem [shape: f32[8,1], index: 6, kind: input, shape index: {}]   ;;  %s776_s7 = inlined_call_operand.hbm [shape: f32[1,8,256], index: 7, kind: output, shape index: {}]  }
   0x1   :  { %v32_v0 = vld [vmem:[%s771_s2] sm:$0xff]  ;;  %489 = vset.pattern.permute.xlu0 %v585_v1  ;;  %125 = vmatprep.mubr.bf16.mxu0 %v585_v1 }
   0x2   :  { %v33_v2 = vmul.f32 %v32_v0, %v32_v0  ;;  %490 = vset.pattern.permute.xlu1 %v585_v1  ;;  %386 = vmatprep.mubr.bf16.mxu1 %v585_v1 }
   0x4   :  { %v34_v3 = vadd.f32 1.0, %v33_v2 }
   0x6   :  { %495 = vrsqrt.f32 %v34_v3 }
   0x7   :  { %13 = vsyncpa [#allocation4], 0  ;;  %v166_v5 = vld [vmem:[%s772_s3] sm:$0xff]  ;;  %v169_v6 = vld [vmem:[%s772_s3 + $0x18] sm:$0xff]  ;;  %vm86_vm0 = vcmask 1043456   ;;  %vm73_vm1 = vcmask 64512  }
   0x8   :  { %v171_v7 = vld [vmem:[%s772_s3 + $0x28] sm:$0xff]  ;;  %v173_v8 = vld [vmem:[%s772_s3 + $0x38] sm:$0xff]  ;;  %v168_v14 = vld [vmem:[%s772_s3 + $0x10] sm:$0xff]  ;;  %vm350_vm2 = vcmask 523264   ;;  %s586_s23 = smov [#allocation3]  }
   0x9   :  { %v478_v9 = vld [vmem:[%s772_s3 + $0x48] sm:$0xff]  ;;  %v480_v10 = vld [vmem:[%s772_s3 + $0x58] sm:$0xff]  ;;  %v170_v15 = vld [vmem:[%s772_s3 + $0x20] sm:$0xff]  ;;  %s460_s24 = sshll.u32 %s586_s23, 4  ;;  %s461_s24 = int_to_ptr.vmem [resolvable:$true] %s460_s24 }
   0xa   :  { %v482_v11 = vld [vmem:[%s772_s3 + $0x68] sm:$0xff]  ;;  %v484_v12 = vld [vmem:[%s772_s3 + $0x78] sm:$0xff]  ;;  %v172_v16 = vld [vmem:[%s772_s3 + $0x30] sm:$0xff]  ;;  %p566_p1 = scmp.lt.s32.totalorder %s461_s24, %s461_s24 }
   0xb   :  { %v167_v13 = vld [vmem:[%s772_s3 + $0x8] sm:$0xff]  ;;  %v477_v17 = vld [vmem:[%s772_s3 + $0x40] sm:$0xff]  ;;  %v479_v18 = vld [vmem:[%s772_s3 + $0x50] sm:$0xff] }
   0xc   :  { %181 = vperm.xlu1 %490, %v167_v13   ;;  %v481_v19 = vld [vmem:[%s772_s3 + $0x60] sm:$0xff]  ;;  %v483_v20 = vld [vmem:[%s772_s3 + $0x70] sm:$0xff]  ;;  %v693_v23 = vld [vmem:[%s770_s1 + $0x8] sm:$0xff] }
   0xd   :  { %v344_v21 = vld [vmem:[%s775_s6] sm:$0xff]  ;;  %v492_v31 = vld [vmem:[%s773_s4 + $0x8] sm:$0xff]   ;;  %v493_v32 = vld [vmem:[%s773_s4 + $0x10] sm:$0xff]  }
   0xe   :  { %v688_v22 = vld [vmem:[%s770_s1] sm:$0xff]  ;;  %v494_v33 = vld [vmem:[%s773_s4 + $0x18] sm:$0xff]  }
   0xf   :  { %v491_v30 = vld [vmem:[%s773_s4] sm:$0xff]  }
  0x10   :  { %v496_v4 = vpop.eup %495  ;;  %186 = vperm.xlu1 %490, %v168_v14  }
  0x11   :  { %38 = vperm.xlu0 %489, %v496_v4  }
  0x14   :  { %196 = vperm.xlu1 %490, %v170_v15  }
  0x15   :  { %176 = vperm.xlu0 %489, %v166_v5  }
  0x18   :  { %206 = vperm.xlu1 %490, %v172_v16  }
  0x19   :  { %191 = vperm.xlu0 %489, %v169_v6  }
  0x1c   :  { %241 = vperm.xlu1 %490, %v477_v17  }
  0x1d   :  { %201 = vperm.xlu0 %489, %v171_v7  }
  0x20   :  { %251 = vperm.xlu1 %490, %v479_v18  }
  0x21   :  { %211 = vperm.xlu0 %489, %v173_v8  }
  0x24   :  { %261 = vperm.xlu1 %490, %v481_v19  }
  0x25   :  { %246 = vperm.xlu0 %489, %v478_v9  }
  0x28   :  { %271 = vperm.xlu1 %490, %v483_v20  }
  0x29   :  { %256 = vperm.xlu0 %489, %v480_v10  }
  0x2c   :  { %347 = vperm.xlu1 %490, %v344_v21  }
  0x2d   :  { %266 = vperm.xlu0 %489, %v482_v11  }
  0x31   :  { %276 = vperm.xlu0 %489, %v484_v12  }
  0x35   :  { %445 = vperm.xlu0 %489, %v32_v0  }
  0x8b   :  { %v182_v34 = vpop.permute.xlu1 %181 }
  0x8f   :  { %v187_v36 = vpop.permute.xlu1 %186 }
  0x90   :  { %v39_v24 = vpop.permute.xlu0 %38 }
  0x91   :  { %v41_v25 = vmul.f32 %v39_v24, %v688_v22  ;;  %v42_v26 = vmul.f32 %v39_v24, %v693_v23 }
  0x93   :  { %v51_v27 = vpack.c.bf16 %v41_v25, %v41_v25  ;;  %v52_v28 = vpack.c.bf16 %v42_v26, %v42_v26  ;;  %v197_v38 = vpop.permute.xlu1 %196 }
  0x94   :  { %v177_v35 = vpop.permute.xlu0 %176 }
  0x95   :  { %472 = vmatprep.subr.msk.bf16.mxu0 %vm86_vm0, %v52_v28  ;;  %v88_v29 = vsel %vm86_vm0, %v51_v27, 0 }
  0x96   :  { %94 = vmatpush1.bf16.msra.mxu0 %v88_v29 }
  0x97   :  { %v714_v40 = vpop.permute.xlu1 %206 }
  0x98   :  { %v192_v37 = vpop.permute.xlu0 %191 }
  0x99   :  { %473 = vmatmul.mubr.msk.bf16.vlgmr.msra.gmra.mrb[0].mxu0 %vm73_vm1, %v491_v30 }
  0x9a   :  { %135 = vmatprep.mubr.bf16.mxu0 %v585_v1 }
  0x9b   :  { %v242_v42 = vpop.permute.xlu1 %241 }
  0x9c   :  { %v712_v39 = vpop.permute.xlu0 %201 }
  0x9f   :  { %v252_v56 = vpop.permute.xlu1 %251 }
  0xa0   :  { %v716_v41 = vpop.permute.xlu0 %211 }
  0xa1   :  { %474 = vmatmul.mubr.msk.bf16.gmra.mrb[4].mxu0 %vm73_vm1, %v492_v31 }
  0xa2   :  { %145 = vmatprep.mubr.bf16.mxu0 %v585_v1 }
  0xa3   :  { %v262_v11 = vpop.permute.xlu1 %261 }
  0xa4   :  { %v247_v50 = vpop.permute.xlu0 %246 }
  0xa8   :  { %v257_v0 = vpop.permute.xlu0 %256 }
  0xa9   :  { %475 = vmatmul.mubr.msk.bf16.gmra.mrb[8].mxu0 %vm73_vm1, %v493_v32 }
  0xaa   :  { %155 = vmatprep.mubr.bf16.mxu0 %v585_v1 }
  0xac   :  { %v267_v25 = vpop.permute.xlu0 %266 }
  0xb1   :  { %476 = vmatmul.mubr.msk.bf16.gmra.mrb[12].mxu0 %vm73_vm1, %v494_v33 }
 0x16c   :  { %v127_v43 = vpop.f32.mrb[0].mxu0 }
 0x16d   :  { %v214_v44 = vadd.f32 %v177_v35, %v127_v43  ;;  %v279_v45 = vadd.f32 %v242_v42, %v127_v43  ;;  %v129_v46 = vpop.f32.mrb[1].mxu0 }
 0x16e   :  { %v215_v47 = vadd.f32 %v177_v35, %v129_v46  ;;  %v280_v48 = vadd.f32 %v242_v42, %v129_v46  ;;  %v131_v49 = vpop.f32.mrb[2].mxu0  ;;  %v272_v42 = vpop.permute.xlu1 %271 }
 0x16f   :  { %497 = vtanh.f32 %v214_v44  ;;  %v216_v51 = vadd.f32 %v182_v34, %v131_v49  ;;  %v133_v52 = vpop.f32.mrb[3].mxu0  ;;  %v281_v53 = vadd.f32 %v247_v50, %v131_v49 }
 0x170   :  { %499 = vtanh.f32 %v279_v45  ;;  %v217_v54 = vadd.f32 %v182_v34, %v133_v52  ;;  %v282_v55 = vadd.f32 %v247_v50, %v133_v52 }
 0x171   :  { %501 = vtanh.f32 %v215_v47 }
 0x172   :  { %503 = vtanh.f32 %v280_v48 }
 0x173   :  { %505 = vtanh.f32 %v216_v51 }
 0x174   :  { %507 = vtanh.f32 %v281_v53  ;;  %v137_v57 = vpop.f32.mrb[4].mxu0  ;;  %v277_v53 = vpop.permute.xlu0 %276 }
 0x175   :  { %509 = vtanh.f32 %v217_v54  ;;  %v218_v58 = vadd.f32 %v187_v36, %v137_v57  ;;  %v283_v59 = vadd.f32 %v252_v56, %v137_v57  ;;  %v139_v60 = vpop.f32.mrb[5].mxu0 }
 0x176   :  { %511 = vtanh.f32 %v282_v55  ;;  %v219_v61 = vadd.f32 %v187_v36, %v139_v60  ;;  %v284_v62 = vadd.f32 %v252_v56, %v139_v60  ;;  %v141_v63 = vpop.f32.mrb[6].mxu0 }
 0x177   :  { %513 = vtanh.f32 %v218_v58  ;;  %v220_v2 = vadd.f32 %v192_v37, %v141_v63  ;;  %v143_v3 = vpop.f32.mrb[7].mxu0  ;;  %v285_v4 = vadd.f32 %v257_v0, %v141_v63 }
 0x178   :  { %515 = vtanh.f32 %v283_v59  ;;  %v221_v6 = vadd.f32 %v192_v37, %v143_v3  ;;  %v286_v8 = vadd.f32 %v257_v0, %v143_v3 }
 0x179   :  { %v498_v5 = vpop.eup %497  ;;  %517 = vtanh.f32 %v219_v61 }
 0x17a   :  { %v718_v7 = vpop.eup %499  ;;  %519 = vtanh.f32 %v284_v62 }
 0x17b   :  { %v502_v9 = vpop.eup %501  ;;  %521 = vtanh.f32 %v220_v2 }
 0x17c   :  { %v720_v10 = vpop.eup %503  ;;  %523 = vtanh.f32 %v285_v4  ;;  %v147_v12 = vpop.f32.mrb[8].mxu0 }
 0x17d   :  { %v506_v13 = vpop.eup %505  ;;  %525 = vtanh.f32 %v221_v6  ;;  %v222_v14 = vadd.f32 %v197_v38, %v147_v12  ;;  %v287_v15 = vadd.f32 %v262_v11, %v147_v12  ;;  %v149_v16 = vpop.f32.mrb[9].mxu0 }
 0x17e   :  { %v722_v17 = vpop.eup %507  ;;  %527 = vtanh.f32 %v286_v8  ;;  %v223_v18 = vadd.f32 %v197_v38, %v149_v16  ;;  %v288_v19 = vadd.f32 %v262_v11, %v149_v16  ;;  %v151_v20 = vpop.f32.mrb[10].mxu0  ;;  %v328_v21 = vpack.c.bf16 %v506_v13, %v498_v5 }
 0x17f   :  { %v510_v24 = vpop.eup %509  ;;  %529 = vtanh.f32 %v222_v14  ;;  %v224_v26 = vadd.f32 %v712_v39, %v151_v20  ;;  %v153_v27 = vpop.f32.mrb[11].mxu0  ;;  %v330_v28 = vpack.c.bf16 %v722_v17, %v718_v7  ;;  %v289_v30 = vadd.f32 %v267_v25, %v151_v20 }
 0x180   :  { %v727_v29 = vpop.eup %511  ;;  %531 = vtanh.f32 %v287_v15  ;;  %v329_v31 = vpack.c.bf16 %v510_v24, %v502_v9  ;;  %v225_v33 = vadd.f32 %v712_v39, %v153_v27  ;;  %v290_v36 = vadd.f32 %v267_v25, %v153_v27  ;;  %v327_v27 = vld [vmem:[%s774_s5] sm:$0xf] }
 0x181   :  { %v514_v32 = vpop.eup %513  ;;  %533 = vtanh.f32 %v223_v18  ;;  %v331_v34 = vpack.c.bf16 %v727_v29, %v720_v10  ;;  %v348_v10 = vpop.permute.xlu1 %347 }
 0x182   :  { %v732_v35 = vpop.eup %515  ;;  %535 = vtanh.f32 %v288_v19  ;;  %354 = vmatprep.subr.bf16.mxu1 %v329_v31 }
 0x183   :  { %v518_v37 = vpop.eup %517  ;;  %537 = vtanh.f32 %v224_v26  ;;  %355 = vmatpush1.bf16.msra.mxu1 %v328_v21 }
 0x184   :  { %v734_v38 = vpop.eup %519  ;;  %539 = vtanh.f32 %v289_v30  ;;  %v157_v43 = vpop.f32.mrb[12].mxu0 }
 0x185   :  { %v522_v44 = vpop.eup %521  ;;  %541 = vtanh.f32 %v225_v33  ;;  %v226_v39 = vadd.f32 %v714_v40, %v157_v43  ;;  %v291_v45 = vadd.f32 %v272_v42, %v157_v43  ;;  %v159_v46 = vpop.f32.mrb[13].mxu0 }
 0x186   :  { %v524_v47 = vpop.eup %523  ;;  %543 = vtanh.f32 %v290_v36  ;;  %v227_v48 = vadd.f32 %v714_v40, %v159_v46  ;;  %v292_v49 = vadd.f32 %v272_v42, %v159_v46  ;;  %v161_v50 = vpop.f32.mrb[14].mxu0  ;;  %v332_v51 = vpack.c.bf16 %v522_v44, %v514_v32 }
 0x187   :  { %v526_v52 = vpop.eup %525  ;;  %545 = vtanh.f32 %v226_v39  ;;  %v228_v54 = vadd.f32 %v716_v41, %v161_v50  ;;  %v163_v55 = vpop.f32.mrb[15].mxu0  ;;  %v334_v56 = vpack.c.bf16 %v524_v47, %v732_v35  ;;  %v293_v58 = vadd.f32 %v277_v53, %v161_v50 }
 0x188   :  { %v528_v57 = vpop.eup %527  ;;  %547 = vtanh.f32 %v291_v45  ;;  %v333_v59 = vpack.c.bf16 %v526_v52, %v518_v37  ;;  %v229_v61 = vadd.f32 %v716_v41, %v163_v55  ;;  %v294_v63 = vadd.f32 %v277_v53, %v163_v55  ;;  %v446_v45 = vpop.permute.xlu0 %445 }
 0x189   :  { %v530_v60 = vpop.eup %529  ;;  %549 = vtanh.f32 %v227_v48  ;;  %v335_v40 = vpack.c.bf16 %v528_v57, %v734_v38 }
 0x18a   :  { %v532_v62 = vpop.eup %531  ;;  %551 = vtanh.f32 %v292_v49  ;;  %356 = vmatprep.subr.bf16.mxu1 %v333_v59 }
 0x18b   :  { %v534_v0 = vpop.eup %533  ;;  %553 = vtanh.f32 %v228_v54  ;;  %357 = vmatpush1.bf16.msra.mxu1 %v332_v51 }
 0x18c   :  { %v536_v2 = vpop.eup %535  ;;  %555 = vtanh.f32 %v293_v58 }
 0x18d   :  { %v538_v3 = vpop.eup %537  ;;  %557 = vtanh.f32 %v229_v61 }
 0x18e   :  { %v540_v4 = vpop.eup %539  ;;  %559 = vtanh.f32 %v294_v63  ;;  %v336_v5 = vpack.c.bf16 %v538_v3, %v530_v60 }
 0x18f   :  { %v542_v6 = vpop.eup %541  ;;  %v338_v8 = vpack.c.bf16 %v540_v4, %v532_v62 }
 0x190   :  { %v544_v9 = vpop.eup %543  ;;  %v337_v41 = vpack.c.bf16 %v542_v6, %v534_v0 }
 0x191   :  { %v546_v11 = vpop.eup %545  ;;  %v339_v12 = vpack.c.bf16 %v544_v9, %v536_v2 }
 0x192   :  { %v548_v13 = vpop.eup %547  ;;  %358 = vmatprep.subr.bf16.mxu1 %v337_v41 }
 0x193   :  { %v550_v14 = vpop.eup %549  ;;  %359 = vmatpush1.bf16.msra.mxu1 %v336_v5 }
 0x194   :  { %v552_v15 = vpop.eup %551 }
 0x195   :  { %v554_v16 = vpop.eup %553 }
 0x196   :  { %v556_v18 = vpop.eup %555  ;;  %v340_v19 = vpack.c.bf16 %v554_v16, %v546_v11 }
 0x197   :  { %v558_v20 = vpop.eup %557  ;;  %v342_v21 = vpack.c.bf16 %v556_v18, %v548_v13 }
 0x198   :  { %v560_v24 = vpop.eup %559  ;;  %v341_v25 = vpack.c.bf16 %v558_v20, %v550_v14 }
 0x199   :  { %v343_v26 = vpack.c.bf16 %v560_v24, %v552_v15 }
 0x19a   :  { %360 = vmatprep.subr.bf16.mxu1 %v341_v25 }
 0x19b   :  { %361 = vmatpush1.bf16.msra.mxu1 %v340_v19 }
 0x19c   :  { %395 = vmatprep.subr.bf16.mxu1 %v331_v34 }
 0x19e   :  { %485 = vmatmul.mubr.msk.bf16.vlgmr.msra.gmra.mrb[0].mxu1 %vm350_vm2, %v327_v27 }
 0x19f   :  { %396 = vmatpush1.bf16.msra.mxu1 %v330_v28  ;;  %427 = vmatprep.mubr.bf16.mxu1 %v585_v1  ;;  %v438_v1 = vstv %s769_s0  ;;  %s561_s0 = scalar_lea.vmem %s461_s24, 256 }
 0x1a0   :  { %397 = vmatprep.subr.bf16.mxu1 %v335_v40  ;;  %p562_p0 = scmp.ne.s32.totalorder %s461_s24, %s561_s0  ;;  %p567_p2 = scmp.lt.s32.totalorder %s561_s0, %s561_s0 }
 0x1a2   :  { %p568_p3 = por %p567_p2, %p566_p1 }
 0x1a3   :  { %398 = vmatpush1.bf16.msra.mxu1 %v334_v56 }
 0x1a4   :  { %399 = vmatprep.subr.bf16.mxu1 %v339_v12  ;;  %p569_p4 = pnand %p568_p3, %p562_p0 }
 0x1a7   :  { %400 = vmatpush1.bf16.msra.mxu1 %v338_v8 }
 0x1a8   :  { %401 = vmatprep.subr.bf16.mxu1 %v343_v26 }
 0x1ab   :  { %402 = vmatpush1.bf16.msra.mxu1 %v342_v21 }
 0x1ae   :  { %486 = vmatmul.mubr.msk.bf16.vlgmr.msra.gmra.mrb[4].mxu1 %vm350_vm2, %v327_v27 }
 0x271   :  { %v388_v30 = vpop.f32.mrb[0].mxu1 }
 0x272   :  { %v390_v31 = vpop.f32.mrb[1].mxu1  ;;  %v389_v34 = vadd.f32 %v388_v30, %v348_v10 }
 0x273   :  { %v392_v32 = vpop.f32.mrb[2].mxu1  ;;  %v391_v7 = vadd.f32 %v390_v31, %v348_v10 }
 0x274   :  { %v393_v33 = vpop.f32.mrb[3].mxu1 }
 0x281   :  { %v429_v29 = vpop.f32.mrb[4].mxu1 }
 0x282   :  { %v430_v35 = vadd.f32 %v429_v29, %v348_v10  ;;  %v431_v36 = vpop.f32.mrb[5].mxu1 }
 0x283   :  { %v432_v17 = vadd.f32 %v431_v36, %v348_v10  ;;  %v433_v28 = vpop.f32.mrb[6].mxu1 }
 0x284   :  { %v436_v37 = vsub.f32 %v430_v35, %v389_v34  ;;  %v434_v38 = vpop.f32.mrb[7].mxu1 }
 0x285   :  { %v437_v42 = vsub.f32 %v432_v17, %v391_v7 }
 0x286   :  { %v439_v43 = vmul.f32 %v438_v1, %v436_v37 }
 0x287   :  { %v440_v44 = vmul.f32 %v438_v1, %v437_v42 }
 0x288   :  { %v441_v39 = vadd.f32 %v439_v43, %v389_v34 }
 0x289   :  { %v442_v46 = vadd.f32 %v440_v44, %v391_v7 }
 0x28a   :  { %v448_v47 = vmul.f32 %v446_v45, %v441_v39 }
 0x28b   :  { %v449_v48 = vmul.f32 %v446_v45, %v442_v46 }
 0x28c   :  { %v450_v49 = vsub.f32 %v688_v22, %v448_v47 }
 0x28d   :  { %v451_v50 = vsub.f32 %v693_v23, %v449_v48 }
 0x28e   :  { %452 = vst [vmem:[#allocation3] sm:$0xff] %v450_v49 }
 0x28f   :  { %453 = vst [vmem:[#allocation3 + $0x8] sm:$0xff] %v451_v50 }
 0x290   :  { %572 = shalt.err (!%p569_p4)
}
 0x291   :  { %s573_s27 = scalar_lea.hbm %s776_s7, 256 }
 0x292   :  { %p574_p5 = scmp.ne.s32.totalorder %s776_s7, %s573_s27  ;;  %p577_p6 = scmp.lt.u32.totalorder %s573_s27, %s776_s7 }
 0x294   :  { %p579_p7 = pnand %p577_p6, %p574_p5 }
 0x296   :  { %582 = shalt.err (!%p579_p7)
}
 0x297   :  { %463 = dma.vmem_to_hbm [thread:$0]  %s461_s24, 256, %s776_s7, [#allocation4]  }
 0x298   :  { %583 = dma.done.wait [#allocation4], 256  }
 0x299   :  { %584 = vsyncadd [#allocation4], 4294967040 }
 0x29a   :  { %467 = vsyncpa [#allocation4], 1 }

</bundles_post_ra>
